<compile_context>
chip_gen: v7x
topology: tpu7x:2x2x1
jax: 0.10.0
libtpu: 0.0.40
codegen_flags: <defaults>
</compile_context>

<pallas_src>
import math
from functools import partial
from typing import NamedTuple

import jax
import jax.numpy as jnp
from jax import lax
from jax.experimental import pallas as pl
from jax.experimental.pallas import tpu as pltpu

LANE = 128


def _round_up(x, m):
    return ((x + m - 1) // m) * m


def _cdiv(a, b):
    return -(-a // b)


# ---------------------------------------------------------------------------
# Kernels
# ---------------------------------------------------------------------------
def _bundler_fused_kernel(x_ref, w_ref, b_ref, o_ref):
    """Small-K path (2*in_feats <= 128): one MXU dot per row tile.

    x_ref: (TM, 2*in_feats)    row tile of [h, c]
    w_ref: (2*in_feats, OF_P)  combined weight.T, lane-padded (resident)
    b_ref: (1, OF_P)           bias, f32, lane-padded (resident)
    o_ref: (TM, OF_P)
    """
    y = jnp.dot(x_ref[...], w_ref[...], preferred_element_type=jnp.float32)
    y = y + b_ref[...]
    # F.normalize(p=2, dim=1): x / max(||x||, 1e-12) == x * min(rsqrt(sum x^2), 1e12).
    # rsqrt uses the EUP slot; the clamp keeps all-zero rows at 0 (no NaN). The
    # zero-padded lanes come from zero weight/bias columns, so they add 0 to sq.
    sq = jnp.sum(y * y, axis=1, keepdims=True)
    scale = jnp.minimum(lax.rsqrt(sq), 1e12)
    o_ref[...] = jnp.maximum(y * scale, 0.0).astype(o_ref.dtype)  # relu


def _bundler_split_kernel(h_ref, c_ref, wh_ref, wc_ref, b_ref, o_ref, acc_ref):
    """General path: concat never materialized; weights optionally K-streamed.

    grid = (row tiles, K tiles); K is the reduction axis -> innermost, "arbitrary".
    h_ref, c_ref : (TM, TK)    row x K tiles of h / c
    wh_ref,wc_ref: (TK, OF_P)  K tile of weight.T halves
    b_ref        : (1, OF_P)   bias, f32 (resident)
    o_ref        : (TM, OF_P)  written once, at the last K step
    acc_ref      : (TM, OF_P)  f32 accumulator scratch (persists across K)
    """
    k = pl.program_id(1)

    @pl.when(k == 0)
    def _init():
        acc_ref[...] = jnp.zeros_like(acc_ref)

    acc_ref[...] += (
        jnp.dot(h_ref[...], wh_ref[...], preferred_element_type=jnp.float32)
        + jnp.dot(c_ref[...], wc_ref[...], preferred_element_type=jnp.float32)
    )

    @pl.when(k == pl.num_programs(1) - 1)
    def _finalize():
        y = acc_ref[...] + b_ref[...]
        sq = jnp.sum(y * y, axis=1, keepdims=True)
        scale = jnp.minimum(lax.rsqrt(sq), 1e12)
        o_ref[...] = jnp.maximum(y * scale, 0.0).astype(o_ref.dtype)


# ---------------------------------------------------------------------------
# Static plan (chip-aware tiling decisions, made once per parameter set)
# ---------------------------------------------------------------------------
class _Plan(NamedTuple):
    fused: bool
    in_feats: int
    out_feats: int
    of_p: int              # out_feats lane-padded to a multiple of 128
    if_p: int              # per-half feature count fed to the kernel (K-padded if tiled)
    tk: int                # K tile (== if_p when the weights stay fully resident)
    compute_dtype: object  # np.dtype
    sublane: int           # dtype row-packing granularity (8 f32 / 16 bf16 / 32 int8)
    mxu_m: int             # MXU M granularity (256 v6e/v7x, 128 v5e)
    tm_cap: int
    budget: int            # VMEM working-set target used for tile sizing
    vmem_cap: int          # hard ceiling for the scoped-vmem request
    use_core_parallel: bool


def _chip_info():
    """Best-effort chip detection (never raises)."""
    kind = ""
    try:
        kind = jax.devices()[0].device_kind.lower()
    except Exception:
        pass
    vmem = None
    try:
        vmem = int(pltpu.get_tpu_info().vmem_capacity_bytes)
    except Exception:
        vmem = None
    return kind, vmem


def _make_plan(in_feats, out_feats, compute_dtype, force_k_tile):
    kind, vmem = _chip_info()
    # v7x has 64 MiB VMEM per TensorCore; treat unknown chips conservatively.
    is_v7 = ("7" in kind) or (vmem is not None and vmem <= (72 << 20)) \
        or (kind == "" and vmem is None)
    mxu_m = 256 if ("v6" in kind or is_v7) else 128
    itemsize = jnp.dtype(compute_dtype).itemsize
    sublane = max(8, 32 // itemsize)

    if is_v7:
        # 64 MiB physical VMEM: modest working set, scoped request capped <=38 MiB
        # (leaves room for Mosaic internal scratch + f32 intermediates).
        budget, vmem_cap, tm_cap = 26 << 20, 38 << 20, 512
    else:
        # v5e / v6e: 128 MiB physical VMEM -- use it (bigger tiles amortize the
        # ~0.35us/step pipeline overhead; measured 512->85%, 1024->86% of roofline).
        budget, vmem_cap, tm_cap = 72 << 20, 96 << 20, 2048

    of_p = _round_up(out_feats, LANE)        # lane-dense (unmasked) stores
    fused = (2 * in_feats <= LANE) and force_k_tile is None
    if fused:
        if_p = tk = in_feats
    else:
        if force_k_tile is not None:
            tk = min(_round_up(force_k_tile, LANE), _round_up(in_feats, LANE))
        elif 2 * 2 * in_feats * of_p * itemsize <= budget // 2:
            tk = in_feats                    # Wh/Wc (double-buffered) stay resident
        else:
            # Stream the weights over a K grid: largest multiple of 128 whose
            # double-buffered (TK, OF_P) blocks (x2 for Wh and Wc) fit half the budget.
            tk = (budget // 2) // (2 * 2 * of_p * itemsize)
            tk = max(LANE, tk // LANE * LANE)
            tk = min(tk, _round_up(in_feats, LANE))
        if_p = _round_up(in_feats, tk)       # zero-padded K rows contribute nothing

    return _Plan(fused=fused, in_feats=in_feats, out_feats=out_feats, of_p=of_p,
                 if_p=if_p, tk=tk, compute_dtype=jnp.dtype(compute_dtype),
                 sublane=sublane, mxu_m=mxu_m, tm_cap=tm_cap, budget=budget,
                 vmem_cap=vmem_cap, use_core_parallel=is_v7)


def _choose_row_tile(n, per_row_bytes, fixed_bytes, plan):
    """Pick (TM, num_row_tiles): fill the VMEM budget, rebalance so awkward N does
    not over-pad, then align TM to the MXU M granularity if that costs <12.5%."""
    avail = max(plan.budget - fixed_bytes, plan.sublane * per_row_bytes)
    tm_max = max(plan.sublane,
                 min(plan.tm_cap,
                     (avail // per_row_bytes) // plan.sublane * plan.sublane))
    n_tiles = _cdiv(n, tm_max)
    tm = _round_up(_cdiv(n, n_tiles), plan.sublane)
    tm_mxu = _round_up(tm, plan.mxu_m)
    if tm_mxu <= tm_max and (n_tiles * tm_mxu - n) * 8 <= n:
        tm = tm_mxu
    return tm, n_tiles


# ---------------------------------------------------------------------------
# Forward (jitted per parameter set; `plan` is a baked-in constant)
# ---------------------------------------------------------------------------
def _forward(h, c, *params, plan):
    n, in_feats = h.shape
    assert in_feats == plan.in_feats and c.shape == h.shape
    cdt = plan.compute_dtype
    h = h.astype(cdt)
    c = c.astype(cdt)
    itemsize = jnp.dtype(cdt).itemsize
    of_p = plan.of_p

    # VMEM accounting (per review): resident weight/bias blocks are counted with
    # the default *double* buffering, and the f32 epilogue temps / accumulator
    # scratch are included; the scoped request is capped per generation.
    if plan.fused:
        kdim = 2 * in_feats
        per_row = (2 * kdim * itemsize       # x tile, 2 buffers
                   + 2 * of_p * itemsize     # out tile, 2 buffers
                   + 3 * of_p * 4)           # f32 epilogue temps (y, y*y, y*scale)
        fixed = 2 * kdim * of_p * itemsize + 2 * of_p * 4   # W + bias, 2 buffers each
    else:
        per_row = (2 * 2 * plan.tk * itemsize   # h, c tiles, 2 buffers each
                   + 2 * of_p * itemsize        # out tile, 2 buffers
                   + 4 * of_p * 4)              # f32 accumulator scratch + epilogue temps
        fixed = 2 * 2 * plan.tk * of_p * itemsize + 2 * of_p * 4  # Wh, Wc, bias blocks

    tm, n_tiles = _choose_row_tile(n, per_row, fixed, plan)
    n_p = tm * n_tiles
    vmem_limit = int(max(16 << 20,
                         min(plan.vmem_cap, fixed + tm * per_row + (4 << 20))))

    cost = pl.CostEstimate(
        flops=2 * n_p * (2 * plan.if_p) * of_p,
        transcendentals=n_p,
        bytes_accessed=itemsize * (n_p * 2 * plan.if_p      # h, c (or x)
                                   + n_p * of_p             # output
                                   + 2 * plan.if_p * of_p)  # weights
                       + 4 * of_p,                          # bias
    )

    if plan.fused:
        wt, b2 = params
        kdim = 2 * in_feats
        # K <= 128: the HBM concat is negligible and halves the MXU push/drain.
        x = jnp.concatenate([h, c], axis=1)
        x = jnp.pad(x, ((0, n_p - n), (0, 0)))
        # CORE_PARALLEL actually shards the row axis across v7x's 2 TensorCores
        # (plain "parallel" does not change codegen); only when both get work.
        sem0 = (pltpu.CORE_PARALLEL
                if (plan.use_core_parallel and n_tiles >= 2)
                else pltpu.PARALLEL)
        out_p = pl.pallas_call(
            _bundler_fused_kernel,
            out_shape=jax.ShapeDtypeStruct((n_p, of_p), cdt),
            grid=(n_tiles,),
            in_specs=[
                pl.BlockSpec((tm, kdim), lambda i: (i, 0)),
                pl.BlockSpec((kdim, of_p), lambda i: (0, 0)),   # resident
                pl.BlockSpec((1, of_p), lambda i: (0, 0)),      # resident
            ],
            out_specs=pl.BlockSpec((tm, of_p), lambda i: (i, 0)),
            compiler_params=pltpu.CompilerParams(
                dimension_semantics=(sem0,),
                vmem_limit_bytes=vmem_limit,
            ),
            cost_estimate=cost,
        )(x, wt, b2)
    else:
        wh, wc, b2 = params
        pad_k = plan.if_p - in_feats                 # zero feature padding: adds 0
        h_p = jnp.pad(h, ((0, n_p - n), (0, pad_k)))
        c_p = jnp.pad(c, ((0, n_p - n), (0, pad_k)))
        k_tiles = plan.if_p // plan.tk
        tk = plan.tk
        out_p = pl.pallas_call(
            _bundler_split_kernel,
            out_shape=jax.ShapeDtypeStruct((n_p, of_p), cdt),
            grid=(n_tiles, k_tiles),
            in_specs=[
                pl.BlockSpec((tm, tk), lambda i, k: (i, k)),
                pl.BlockSpec((tm, tk), lambda i, k: (i, k)),
                pl.BlockSpec((tk, of_p), lambda i, k: (k, 0)),
                pl.BlockSpec((tk, of_p), lambda i, k: (k, 0)),
                pl.BlockSpec((1, of_p), lambda i, k: (0, 0)),   # resident
            ],
            out_specs=pl.BlockSpec((tm, of_p), lambda i, k: (i, 0)),
            scratch_shapes=[pltpu.VMEM((tm, of_p), jnp.float32)],
            compiler_params=pltpu.CompilerParams(
                # The accumulator scratch must stay private to one core, so the
                # row axis stays plain PARALLEL here (CORE_PARALLEL is only used
                # on the scratch-free fused path). K is the reduction -> ARBITRARY,
                # innermost.
                dimension_semantics=(pltpu.PARALLEL, pltpu.ARBITRARY),
                vmem_limit_bytes=vmem_limit,
            ),
            cost_estimate=cost,
        )(h_p, c_p, wh, wc, b2)

    # Drop the row / lane padding.
    return out_p[:n, :plan.out_feats]


# ---------------------------------------------------------------------------
# User-facing wrapper: one-time parameter prep + jitted forward
# ---------------------------------------------------------------------------
class BundlerPallas:
    """forward(h, c) == relu(F.normalize(cat([h, c], 1) @ W.T + b, p=2, dim=1))."""

    def __init__(self, weight, bias, *, compute_dtype=None, force_k_tile=None):
        out_feats, two_in = weight.shape
        if two_in % 2:
            raise ValueError("weight must have 2*in_feats input features")
        in_feats = two_in // 2
        # Default compute dtype keeps the parameter precision (no silent down-cast
        # of f32 weights); pass jnp.bfloat16 explicitly for bf16 loads/stores.
        cdt = jnp.dtype(compute_dtype) if compute_dtype is not None else jnp.dtype(weight.dtype)
        plan = _make_plan(in_feats, out_feats, cdt, force_k_tile)

        # One-time prep: transpose, cast, lane-pad (zero cols don't affect the row
        # norm), and K-pad (zero rows contribute nothing). Done once, not per call.
        wt = jnp.asarray(weight).T.astype(cdt)                  # (2*in_feats, out_feats)
        pad_of = plan.of_p - out_feats
        b2 = jnp.pad(jnp.asarray(bias, jnp.float32), (0, pad_of)).reshape(1, plan.of_p)
        if plan.fused:
            params = (jnp.pad(wt, ((0, 0), (0, pad_of))), b2)
        else:
            pad_k = plan.if_p - in_feats
            wh = jnp.pad(wt[:in_feats], ((0, pad_k), (0, pad_of)))
            wc = jnp.pad(wt[in_feats:], ((0, pad_k), (0, pad_of)))
            params = (wh, wc, b2)

        self.plan = plan
        self.params = tuple(jax.device_put(p) for p in params)
        self._fwd = jax.jit(partial(_forward, plan=plan))

    def __call__(self, h, c):
        return self._fwd(h, c, *self.params)


# ---------------------------------------------------------------------------
# Demo / self-check
# ---------------------------------------------------------------------------
def _reference(h, c, weight, bias):
    x = jnp.concatenate([h, c], axis=1)
    y = x @ weight.T + bias
    y = y / jnp.maximum(jnp.linalg.norm(y, axis=1, keepdims=True), 1e-12)
    return jnp.maximum(y, 0.0)


def _xavier_uniform(key, shape, gain):
    fan_out, fan_in = shape
    a = gain * math.sqrt(6.0 / (fan_in + fan_out))
    return jax.random.uniform(key, shape, jnp.float32, minval=-a, maxval=a)


def _make_inputs(key, n, in_feats, out_feats):
    k_h, k_c, k_w, k_b = jax.random.split(key, 4)
    h = jax.random.normal(k_h, (n, in_feats), jnp.float32)
    c = jax.random.normal(k_c, (n, in_feats), jnp.float32)
    gain = math.sqrt(2.0)                                   # calculate_gain('relu')
    weight = _xavier_uniform(k_w, (out_feats, 2 * in_feats), gain)
    bound = 1.0 / math.sqrt(2.0 * in_feats)                 # nn.Linear default bias init
    bias = jax.random.uniform(k_b, (out_feats,), jnp.float32, minval=-bound, maxval=bound)
    return h, c, weight, bias


def _check(tag, out, ref):
    assert out.shape == ref.shape, (tag, out.shape, ref.shape)
    err = float(jnp.max(jnp.abs(out.astype(jnp.float32) - ref)))
    assert jnp.allclose(out.astype(jnp.float32), ref, atol=2e-4, rtol=2e-4), (tag, err)


if __name__ == "__main__":
    key = jax.random.PRNGKey(0)
    k0, k1 = jax.random.split(key)

    # 1) Small demo shapes: 2*in_feats = 32 <= 128 -> fused single-dot kernel.
    h, c, w, bvec = _make_inputs(k0, 8, 16, 32)
    out = BundlerPallas(w, bvec)(h, c)
    jax.block_until_ready(out)
    _check("fused", out, _reference(h, c, w, bvec))

    # 2) Wider features + awkward N -> split kernel, weights resident (1 K step).
    h2, c2, w2, bvec2 = _make_inputs(k1, 300, 192, 96)
    out2 = BundlerPallas(w2, bvec2)(h2, c2)
    jax.block_until_ready(out2)
    _check("split_resident", out2, _reference(h2, c2, w2, bvec2))

    # 3) Same problem with weight K-streaming forced (tk=128 -> K padded to 256,
    #    2 K steps) to exercise the accumulator path used for large widths.
    out3 = BundlerPallas(w2, bvec2, force_k_tile=128)(h2, c2)
    jax.block_until_ready(out3)
    _check("split_ktiled", out3, _reference(h2, c2, w2, bvec2))

    print("KERNEL_OK")
</pallas_src>

<mosaic_0001>
module attributes {stable_mosaic.version = 11 : i64} {
  func.func @_bundler_fused_kernel(%arg0: i32, %arg1: memref<8x32xf32, #tpu.memory_space<vmem>>, %arg2: memref<32x128xf32, #tpu.memory_space<vmem>>, %arg3: memref<1x128xf32, #tpu.memory_space<vmem>>, %arg4: memref<8x128xf32, #tpu.memory_space<vmem>>) attributes {dimension_semantics = [#tpu.dimension_semantics<parallel>], iteration_bounds = array<i64: 1>, scalar_prefetch = 0 : i64, scratch_operands = 0 : i64, tpu.core_type = #tpu.core_type<tc>, window_params = [{transform_indices = @transform_0, window_bounds = array<i64: 8, 32>}, {pipeline_mode = #tpu.pipeline_mode<synchronous>, transform_indices = @transform_1, window_bounds = array<i64: 32, 128>}, {pipeline_mode = #tpu.pipeline_mode<synchronous>, transform_indices = @transform_2, window_bounds = array<i64: 1, 128>}, {transform_indices = @transform_3, window_bounds = array<i64: 8, 128>}]} {
    %c0 = arith.constant 0 : index
    %c0_0 = arith.constant 0 : index
    %0 = vector.load %arg1[%c0, %c0_0] : memref<8x32xf32, #tpu.memory_space<vmem>>, vector<8x32xf32>
    %c0_1 = arith.constant 0 : index
    %c0_2 = arith.constant 0 : index
    %1 = vector.load %arg2[%c0_1, %c0_2] : memref<32x128xf32, #tpu.memory_space<vmem>>, vector<32x128xf32>
    %cst = arith.constant dense<0.000000e+00> : vector<8x128xf32>
    %2 = tpu.matmul %0, %1, %cst {dimension_numbers = #tpu.dot_dimension_numbers<[1], [0], [0], [1], [0, 0, 1, 1], [], []>} : vector<8x32xf32>, vector<32x128xf32>, vector<8x128xf32> -> vector<8x128xf32>
    %c0_3 = arith.constant 0 : index
    %c0_4 = arith.constant 0 : index
    %3 = vector.load %arg3[%c0_3, %c0_4] : memref<1x128xf32, #tpu.memory_space<vmem>>, vector<1x128xf32>
    %4 = vector.broadcast %3 : vector<1x128xf32> to vector<8x128xf32>
    %5 = arith.addf %2, %4 : vector<8x128xf32>
    %6 = arith.mulf %5, %5 : vector<8x128xf32>
    %cst_5 = arith.constant dense<0.000000e+00> : vector<8xf32>
    %7 = vector.multi_reduction <add>, %6, %cst_5 [1] : vector<8x128xf32> to vector<8xf32>
    %8 = vector.shape_cast %7 : vector<8xf32> to vector<8x1xf32>
    %9 = math.rsqrt %8 : vector<8x1xf32>
    %cst_6 = arith.constant 9.99999995E+11 : f32
    %10 = vector.broadcast %cst_6 : f32 to vector<8x1xf32>
    %11 = arith.minimumf %9, %10 : vector<8x1xf32>
    %12 = vector.broadcast %11 : vector<8x1xf32> to vector<8x128xf32>
    %13 = arith.mulf %5, %12 : vector<8x128xf32>
    %cst_7 = arith.constant 0.000000e+00 : f32
    %14 = vector.broadcast %cst_7 : f32 to vector<8x128xf32>
    %15 = arith.maximumf %13, %14 : vector<8x128xf32>
    %c0_8 = arith.constant 0 : index
    %c0_9 = arith.constant 0 : index
    %16 = vector.load %arg4[%c0_8, %c0_9] : memref<8x128xf32, #tpu.memory_space<vmem>>, vector<8x128xf32>
    tpu.vector_store %arg4[%c0_8, %c0_9], %15 {strides = array<i32>} : memref<8x128xf32, #tpu.memory_space<vmem>>, vector<8x128xf32>,
    return
  }
  func.func @transform_0(%arg0: i32) -> (i32, i32) {
    %c0_i32 = arith.constant 0 : i32
    %c0_i32_0 = arith.constant 0 : i32
    return %arg0, %c0_i32 : i32, i32
  }
  func.func @transform_1(%arg0: i32) -> (i32, i32) {
    %c0_i32 = arith.constant 0 : i32
    %c0_i32_0 = arith.constant 0 : i32
    %c0_i32_1 = arith.constant 0 : i32
    return %c0_i32, %c0_i32_0 : i32, i32
  }
  func.func @transform_2(%arg0: i32) -> (i32, i32) {
    %c0_i32 = arith.constant 0 : i32
    %c0_i32_0 = arith.constant 0 : i32
    %c0_i32_1 = arith.constant 0 : i32
    return %c0_i32, %c0_i32_0 : i32, i32
  }
  func.func @transform_3(%arg0: i32) -> (i32, i32) {
    %c0_i32 = arith.constant 0 : i32
    %c0_i32_0 = arith.constant 0 : i32
    return %arg0, %c0_i32 : i32, i32
  }
}

</mosaic_0001>

<bundles_post_ra>
// kernel: _forward.1
= control target key start
LH: loop header
LB: loop body
LE: loop exit
PB: predicated region body
PF: predicated region fallthrough
CT: control target
= control target key end

     0   :  { %8 = vsyncpa [#allocation3], 0  ;;  %s276_s0 = inlined_call_operand.vmem [shape: f32[8,32], index: 0, kind: input, shape index: {}]   ;;  %s277_s1 = inlined_call_operand.hbm [shape: f32[32,128], index: 1, kind: input, shape index: {}]   ;;  %s278_s2 = inlined_call_operand.vmem [shape: f32[1,128], index: 2, kind: input, shape index: {}]   ;;  %s279_s3 = inlined_call_operand.hbm [shape: f32[8,128], index: 3, kind: output, shape index: {}]  }
   0x1   :  { %9 = vsyncpa [#allocation4], 0  ;;  %s219_s12 = smov [#allocation2]   ;;  %s171_s16 = scalar_lea.hbm %s277_s1, 512 }
   0x2   :  { %s17_s13 = sshll.u32 %s219_s12, 4  ;;  %p172_p0 = scmp.ne.s32.totalorder %s277_s1, %s171_s16  ;;  %s18_s13 = int_to_ptr.vmem [resolvable:$true] %s17_s13 }
   0x3   :  { %p175_p1 = scmp.lt.u32.totalorder %s171_s16, %s277_s1 }
   0x5   :  { %p177_p2 = pnand %p175_p1, %p172_p0 }
   0x7   :  { %180 = shalt.err (!%p177_p2)
}
   0x8   :  { %s181_s21 = scalar_lea.vmem %s18_s13, 512  ;;  %p186_p4 = scmp.lt.s32.totalorder %s18_s13, %s18_s13 }
   0x9   :  { %p182_p3 = scmp.ne.s32.totalorder %s18_s13, %s181_s21  ;;  %p187_p5 = scmp.lt.s32.totalorder %s181_s21, %s181_s21 }
   0xb   :  { %p188_p6 = por %p187_p5, %p186_p4 }
   0xd   :  { %p189_p7 = pnand %p188_p6, %p182_p3 }
   0xf   :  { %192 = shalt.err (!%p189_p7)
}
  0x10   :  { %s220_s22 = smov 128   ;;  %s221_s23 = smov 8  }
  0x11   :  { %23 = dma.hbm_to_vmem [thread:$0]  %s277_s1, 512, %s18_s13, [#allocation3], %s220_s22, %s220_s22, %s221_s23  }
  0x12   :  { %215 = dma.done.wait [#allocation3], 512  }
  0x13   :  { %216 = vsyncadd [#allocation3], 4294966784  ;;  %v222_v0 = vmov 0.0|0.0   ;;  %vm223_vm0 = vmmov 0   ;;  %v224_v1 = vmov 0.0   ;;  %v30_v2 = vld [vmem:[#allocation2] sm:$0xff] }
  0x14   :  { %156 = vmatprep.subr.bf16.mxu0 %v222_v0  ;;  %153 = vmatprep.mubr.msk.f32.mxu0 %vm223_vm0, %v224_v1  ;;  %v31_v3 = vld [vmem:[#allocation2 + $0x8] sm:$0xff]  ;;  %v32_v4 = vld [vmem:[#allocation2 + $0x10] sm:$0xff]  ;;  %v33_v6 = vld [vmem:[#allocation2 + $0x18] sm:$0xff]  ;;  %vm41_vm1 = vcmask 261120   ;;  %s225_s29 = smov [#allocation5]  }
  0x15   :  { %v157_v5 = vpack.c.bf16 %v31_v3, %v30_v2  ;;  %v160_v7 = vpack.c.bf16 %v33_v6, %v32_v4  ;;  %v29_v8 = vld [vmem:[%s276_s0] sm:$0xff]  ;;  %s129_s30 = sshll.u32 %s225_s29, 4  ;;  %s130_s30 = int_to_ptr.vmem [resolvable:$true] %s129_s30 }
  0x16   :  { %v138_v9 = vld [vmem:[%s278_s2] ss:$0 sm:$0xff]  ;;  %s193_s0 = scalar_lea.vmem %s130_s30, 128  ;;  %p198_p9 = scmp.lt.s32.totalorder %s130_s30, %s130_s30 }
  0x17   :  { %158 = vmatpush3.bf16.msra.mxu0 %v157_v5  ;;  %p194_p8 = scmp.ne.s32.totalorder %s130_s30, %s193_s0  ;;  %p199_p10 = scmp.lt.s32.totalorder %s193_s0, %s193_s0 }
  0x18   :  { %159 = vmatprep.subr.bf16.mxu0 %v222_v0 }
  0x19   :  { %p200_p11 = por %p199_p10, %p198_p9 }
  0x1b   :  { %161 = vmatpush3.bf16.msra.mxu0 %v160_v7  ;;  %p201_p12 = pnand %p200_p11, %p194_p8 }
  0x1e   :  { %154 = vmatmul.mubr.msk.f32.vlgmr.msra.gmra.mrb[0].mxu0 %vm41_vm1, %v29_v8 }
  0xf1   :  { %v111_v10 = vpop.f32.mrb[0].mxu0 }
  0xf2   :  { %v112_v11 = vadd.f32 %v138_v9, %v111_v10  ;;  %v155_v12 = vpop.f32.mrb[1].mxu0 }
  0xf4   :  { %v115_v13 = vmul.f32 %v112_v11, %v112_v11 }
  0xf6   :  { %116 = vadd.xlane.f32.xlu0 %v115_v13 }
 0x183   :  { %v117_v14 = vpop.xlane.xlu0 %116 }
 0x184   :  { %169 = vrsqrt.f32 %v117_v14 }
 0x18e   :  { %v170_v15 = vpop.eup %169 }
 0x18f   :  { %v119_v16 = vmin.f32 %v170_v15, 1e+12 }
 0x191   :  { %v120_v17 = vmul.f32 %v119_v16, %v112_v11 }
 0x193   :  { %v121_v18 = vmax.f32 %v120_v17, 0.0 }
 0x195   :  { %122 = vst [vmem:[#allocation5] sm:$0xff] %v121_v18 }
 0x196   :  { %204 = shalt.err (!%p201_p12)
}
 0x197   :  { %s205_s5 = scalar_lea.hbm %s279_s3, 128 }
 0x198   :  { %p206_p13 = scmp.ne.s32.totalorder %s279_s3, %s205_s5  ;;  %p209_p0 = scmp.lt.u32.totalorder %s205_s5, %s279_s3 }
 0x19a   :  { %p211_p1 = pnand %p209_p0, %p206_p13 }
 0x19c   :  { %214 = shalt.err (!%p211_p1)
}
 0x19d   :  { %132 = dma.vmem_to_hbm [thread:$0]  %s130_s30, 128, %s279_s3, [#allocation4]  }
 0x19e   :  { %217 = dma.done.wait [#allocation4], 128  }
 0x19f   :  { %218 = vsyncadd [#allocation4], 4294967168 }
 0x1a0   :  { %136 = vsyncpa [#allocation3], 1 }
 0x1a1   :  { %137 = vsyncpa [#allocation4], 1 }

</bundles_post_ra>
